<compile_context>
chip_gen: v6e
topology: v6e:2x2x1
jax: 0.10.0
libtpu: 0.0.40
codegen_flags: <defaults>
</compile_context>

<pallas_src>
import functools

import jax
import jax.numpy as jnp
from jax import lax
from jax.experimental import pallas as pl
from jax.experimental.pallas import tpu as pltpu

BN_EPS = 1e-5
_MIB = 1024 * 1024


def _round_up(x, m):
    return (x + m - 1) // m * m


def _vmem_capacity_bytes():
    """Trace-time VMEM capacity query; conservative fallback if unavailable."""
    try:
        info = pltpu.get_tpu_info()
        for attr in ("vmem_capacity_bytes", "vmem_size_bytes", "vmem_bytes"):
            v = getattr(info, attr, None)
            if v:
                return int(v)
    except Exception:
        pass
    return 64 * _MIB


_VMEM_CAP = _vmem_capacity_bytes()
# v7x (64 MiB/TC): stay at 32 MiB scoped; v5e/v6e (128 MiB): use ~96 MiB.
_VMEM_LIMIT = 32 * _MIB if _VMEM_CAP <= 64 * _MIB else min(96 * _MIB, (_VMEM_CAP * 3) // 4)
_DEFAULT_TILE_M = 512 if _VMEM_CAP <= 64 * _MIB else 1024


# --------------------------------------------------------------------------- kernels
def _conv_stats_kernel(p_ref, w_ref, conv_ref, sum_ref, ssq_ref, acc_ref):
    """Grid (m_tile, k_tile): K-tiled conv-as-matmul with f32 accumulation; on the
    last K step, emit the conv tile and the per-channel partial sum / sum-of-squares
    (the stats reduction is free VPU filler while the tile is resident in VMEM)."""
    k = pl.program_id(1)

    @pl.when(k == 0)
    def _():
        acc_ref[...] = jnp.zeros_like(acc_ref)

    acc_ref[...] += jnp.dot(p_ref[...], w_ref[...], preferred_element_type=jnp.float32)

    @pl.when(k == pl.num_programs(1) - 1)
    def _():
        acc = acc_ref[...]
        conv_ref[...] = acc.astype(conv_ref.dtype)
        # Direct full-block stores (no concatenate/relayout). Padded rows are zero
        # -> contribute nothing; mean/var later divide by the TRUE M.
        sum_ref[...] = jnp.sum(acc, axis=0, keepdims=True)[None]
        ssq_ref[...] = jnp.sum(acc * acc, axis=0, keepdims=True)[None]


def _bn_relu_kernel(conv_ref, scale_ref, shift_ref, o_ref):
    """Per-M-tile fused BN scale/shift + ReLU, single elementwise pass."""
    y = conv_ref[...].astype(jnp.float32) * scale_ref[...] + shift_ref[...]
    o_ref[...] = jnp.maximum(y, 0.0).astype(o_ref.dtype)


# --------------------------------------------------------------------------- glue
def _im2col_padded(x_nhwc, ksize, stride, pad, ho, wo, k_pad, m_pad, dtype):
    """im2col built directly at the padded (m_pad, k_pad) shape in `dtype`:
    cast + K-padding are fused into the single concatenate that materializes the
    patch matrix (no extra pad/astype passes)."""
    n, h, w, c = x_nhwc.shape
    xp = jnp.pad(x_nhwc.astype(dtype), ((0, 0), (pad, pad), (pad, pad), (0, 0)))
    taps = []
    for kh in range(ksize):
        for kw in range(ksize):
            taps.append(
                xp[:, kh:kh + stride * ho:stride, kw:kw + stride * wo:stride, :]
            )  # (N, Ho, Wo, Cin)
    kdim = ksize * ksize * c
    if k_pad > kdim:
        taps.append(jnp.zeros((n, ho, wo, k_pad - kdim), dtype))
    patches = jnp.concatenate(taps, axis=-1).reshape(n * ho * wo, k_pad)
    m_true = n * ho * wo
    if m_pad > m_true:
        patches = jnp.pad(patches, ((0, m_pad - m_true), (0, 0)))
    return patches


@functools.partial(jax.jit,
                   static_argnames=("ksize", "stride", "pad", "tile_m", "mxu_bf16"))
def conv_block_forward(x_nchw, weight_oihw, gamma, beta, *,
                       ksize=3, stride=2, pad=1, tile_m=None, mxu_bf16=True):
    """ConvBlock forward. x: (N, Cin, H, W); weight: (Cout, Cin, KH, KW)."""
    n, cin, h, w = x_nchw.shape
    cout = weight_oihw.shape[0]
    out_dtype = x_nchw.dtype

    # bf16 MXU operands by default (bf16-native MXUs; f32 matmul decomposes into
    # multiple passes).  mxu_bf16=False keeps the exact f32 path.
    cdtype = jnp.bfloat16 if (mxu_bf16 or x_nchw.dtype == jnp.bfloat16) else x_nchw.dtype
    conv_dtype = cdtype  # intermediate stored narrow; stats come from the f32 acc

    ho = (h + 2 * pad - ksize) // stride + 1
    wo = (w + 2 * pad - ksize) // stride + 1
    m_true = n * ho * wo
    kdim = ksize * ksize * cin

    # ---- K (contraction) padding / tiling -----------------------------------------
    if kdim >= 512:
        k_pad = _round_up(kdim, 128)            # unmasked loads, full MXU passes
        if k_pad > 512:
            tile_k = 256                        # matches the 256-deep MXU, caps VMEM
            k_pad = _round_up(k_pad, tile_k)
        else:
            tile_k = k_pad
    else:
        # small K: sublane-pack aligned (16 for bf16, 8 for f32)
        k_pad = _round_up(kdim, 16 if cdtype == jnp.bfloat16 else 8)
        tile_k = k_pad
    num_k = k_pad // tile_k

    # ---- Cout padding (lane-dense; 256-wide when compute-bound on 256x256 MXUs) ----
    c_align = 256 if (cout >= 256 and kdim >= 1024) else 128
    c_pad = _round_up(cout, c_align)

    # ---- M tiling: big tiles amortize per-step overhead; even tile count so the two
    # v7x TensorCores split "parallel" work evenly. -----------------------------------
    tm = _DEFAULT_TILE_M if tile_m is None else tile_m
    tile = min(_round_up(tm, 8), _round_up(m_true, 8))
    num_tiles = -(-m_true // tile)
    if num_tiles > 1 and num_tiles % 2 == 1:
        num_tiles += 1
        tile = _round_up(-(-m_true // num_tiles), 8)
    m_pad = num_tiles * tile

    # ---- host-side data prep (single materialization of the padded patch matrix) ---
    x_nhwc = jnp.transpose(x_nchw, (0, 2, 3, 1))
    patches = _im2col_padded(x_nhwc, ksize, stride, pad, ho, wo, k_pad, m_pad, cdtype)
    # (Cout, Cin, KH, KW) -> (KH, KW, Cin, Cout) -> (K, Cout), matching patch order.
    wmat = jnp.transpose(weight_oihw, (2, 3, 1, 0)).reshape(kdim, cout).astype(cdtype)
    wmat = jnp.pad(wmat, ((0, k_pad - kdim), (0, c_pad - cout)))

    in_item = jnp.dtype(cdtype).itemsize
    conv_item = jnp.dtype(conv_dtype).itemsize
    out_item = jnp.dtype(out_dtype).itemsize

    # ---- Phase 1: K-tiled conv matmul + per-tile partial BN statistics --------------
    conv_out, sums, sumsq = pl.pallas_call(
        _conv_stats_kernel,
        out_shape=(
            jax.ShapeDtypeStruct((m_pad, c_pad), conv_dtype),
            jax.ShapeDtypeStruct((num_tiles, 1, c_pad), jnp.float32),
            jax.ShapeDtypeStruct((num_tiles, 1, c_pad), jnp.float32),
        ),
        grid=(num_tiles, num_k),
        in_specs=[
            pl.BlockSpec((tile, tile_k), lambda i, k: (i, k)),     # patch stream
            pl.BlockSpec((tile_k, c_pad), lambda i, k: (k, 0)),    # weight K-slab
        ],
        out_specs=(
            pl.BlockSpec((tile, c_pad), lambda i, k: (i, 0)),
            pl.BlockSpec((1, 1, c_pad), lambda i, k: (i, 0, 0)),
            pl.BlockSpec((1, 1, c_pad), lambda i, k: (i, 0, 0)),
        ),
        scratch_shapes=[pltpu.VMEM((tile, c_pad), jnp.float32)],
        compiler_params=pltpu.CompilerParams(
            dimension_semantics=("parallel", "arbitrary"),
            vmem_limit_bytes=_VMEM_LIMIT,
        ),
        cost_estimate=pl.CostEstimate(
            flops=2 * m_pad * k_pad * c_pad,
            transcendentals=0,
            bytes_accessed=(m_pad * k_pad + num_tiles * k_pad * c_pad) * in_item
                           + m_pad * c_pad * conv_item + num_tiles * 2 * c_pad * 4,
        ),
    )(patches, wmat)

    # ---- Per-channel BN math (tiny, plain JAX) ---------------------------------------
    mean = jnp.sum(sums, axis=(0, 1)) / m_true                 # divide by TRUE M
    var = jnp.maximum(jnp.sum(sumsq, axis=(0, 1)) / m_true - mean * mean, 0.0)
    inv_std = lax.rsqrt(var + BN_EPS)
    gamma_p = jnp.pad(gamma.astype(jnp.float32), (0, c_pad - cout))
    beta_p = jnp.pad(beta.astype(jnp.float32), (0, c_pad - cout))
    scale = (gamma_p * inv_std).reshape(1, c_pad)
    shift = (beta_p - mean * gamma_p * inv_std).reshape(1, c_pad)

    # ---- Phase 2: fused scale/shift + ReLU (aliased in-place when dtypes match) -----
    alias = {0: 0} if jnp.dtype(conv_dtype) == jnp.dtype(out_dtype) else {}
    out_flat = pl.pallas_call(
        _bn_relu_kernel,
        out_shape=jax.ShapeDtypeStruct((m_pad, c_pad), out_dtype),
        grid=(num_tiles,),
        in_specs=[
            pl.BlockSpec((tile, c_pad), lambda i: (i, 0)),
            pl.BlockSpec((1, c_pad), lambda i: (0, 0)),
            pl.BlockSpec((1, c_pad), lambda i: (0, 0)),
        ],
        out_specs=pl.BlockSpec((tile, c_pad), lambda i: (i, 0)),
        input_output_aliases=alias,
        compiler_params=pltpu.CompilerParams(
            dimension_semantics=("parallel",),
            vmem_limit_bytes=_VMEM_LIMIT,
        ),
        cost_estimate=pl.CostEstimate(
            flops=2 * m_pad * c_pad,
            transcendentals=0,
            bytes_accessed=m_pad * c_pad * (conv_item + out_item) + 2 * c_pad * 4,
        ),
    )(conv_out, scale, shift)

    # Slice off padding, (M, Cout) -> (N, Ho, Wo, Cout) -> NCHW.
    out = out_flat[:m_true, :cout].reshape(n, ho, wo, cout)
    return jnp.transpose(out, (0, 3, 1, 2))


# --------------------------------------------------------------------------- reference
def _reference_forward(x_nchw, weight_oihw, gamma, beta, *, stride=2, pad=1):
    """Plain-JAX reference (conv -> training-mode BN -> ReLU)."""
    y = lax.conv_general_dilated(
        x_nchw, weight_oihw,
        window_strides=(stride, stride),
        padding=((pad, pad), (pad, pad)),
        dimension_numbers=("NCHW", "OIHW", "NCHW"),
    )
    mean = jnp.mean(y, axis=(0, 2, 3), keepdims=True)
    var = jnp.mean((y - mean) ** 2, axis=(0, 2, 3), keepdims=True)
    yn = (y - mean) * lax.rsqrt(var + BN_EPS)
    yn = yn * gamma.reshape(1, -1, 1, 1) + beta.reshape(1, -1, 1, 1)
    return jnp.maximum(yn, 0.0)


if __name__ == "__main__":
    key = jax.random.PRNGKey(0)
    k_x, k_w, k_g, k_b = jax.random.split(key, 4)

    N, Cin, H, W = 2, 4, 16, 16
    Cout, K = 8, 3

    x = jax.random.normal(k_x, (N, Cin, H, W), dtype=jnp.float32)
    weight = jax.random.normal(k_w, (Cout, Cin, K, K), dtype=jnp.float32) * 0.1
    gamma = 1.0 + 0.1 * jax.random.normal(k_g, (Cout,), dtype=jnp.float32)
    beta = 0.1 * jax.random.normal(k_b, (Cout,), dtype=jnp.float32)

    ref = _reference_forward(x, weight, gamma, beta, stride=2, pad=1)

    # 1) Strict-numerics path (f32 MXU + f32 intermediate); tile_m=40 gives a
    #    multi-tile grid with a zero-padded last tile, validating true-M BN stats.
    out_exact = conv_block_forward(x, weight, gamma, beta, ksize=K, stride=2, pad=1,
                                   tile_m=40, mxu_bf16=False)
    out_exact = jax.block_until_ready(out_exact)
    assert out_exact.shape == (N, Cout, 8, 8), out_exact.shape
    assert jnp.allclose(out_exact, ref, atol=1e-4, rtol=1e-4), "mismatch (strict f32 path)"

    # 2) Default fast path: bf16 MXU operands + bf16 conv intermediate, f32 output.
    out_fast = conv_block_forward(x, weight, gamma, beta, ksize=K, stride=2, pad=1)
    out_fast = jax.block_until_ready(out_fast)
    assert out_fast.shape == (N, Cout, 8, 8), out_fast.shape
    assert jnp.allclose(out_fast, ref, atol=5e-2, rtol=5e-2), "mismatch (bf16 fast path)"

    # 3) bf16 caller: exercises the phase-2 input_output_aliases (in-place BN+ReLU
    #    over the conv intermediate).
    out_bf16 = conv_block_forward(x.astype(jnp.bfloat16), weight, gamma, beta,
                                  ksize=K, stride=2, pad=1)
    out_bf16 = jax.block_until_ready(out_bf16)
    assert out_bf16.dtype == jnp.bfloat16
    assert jnp.allclose(out_bf16.astype(jnp.float32), ref, atol=1e-1, rtol=1e-1), \
        "mismatch (bf16 caller / aliased path)"

    print("KERNEL_OK")
</pallas_src>

<mosaic_0001>
module attributes {stable_mosaic.version = 11 : i64} {
  func.func @_conv_stats_kernel(%arg0: i32, %arg1: i32, %arg2: memref<40x40xf32, #tpu.memory_space<vmem>>, %arg3: memref<40x128xf32, #tpu.memory_space<vmem>>, %arg4: memref<40x128xf32, #tpu.memory_space<vmem>>, %arg5: memref<1x1x128xf32, #tpu.memory_space<vmem>>, %arg6: memref<1x1x128xf32, #tpu.memory_space<vmem>>, %arg7: memref<40x128xf32, #tpu.memory_space<vmem>>) attributes {dimension_semantics = [#tpu.dimension_semantics<parallel>, #tpu.dimension_semantics<arbitrary>], iteration_bounds = array<i64: 4, 1>, scalar_prefetch = 0 : i64, scratch_operands = 1 : i64, tpu.core_type = #tpu.core_type<tc>, window_params = [{transform_indices = @transform_0, window_bounds = array<i64: 40, 40>}, {transform_indices = @transform_1, window_bounds = array<i64: 40, 128>}, {transform_indices = @transform_2, window_bounds = array<i64: 40, 128>}, {transform_indices = @transform_3, window_bounds = array<i64: 1, 1, 128>}, {transform_indices = @transform_4, window_bounds = array<i64: 1, 1, 128>}]} {
    %c0_i32 = arith.constant 0 : i32
    %0 = arith.cmpi eq, %arg1, %c0_i32 : i32
    %1 = arith.extui %0 : i1 to i32
    %c0_i32_0 = arith.constant 0 : i32
    %2 = arith.cmpi ne, %1, %c0_i32_0 : i32
    scf.if %2 {
      %cst_10 = arith.constant 0.000000e+00 : f32
      %12 = vector.broadcast %cst_10 : f32 to vector<40x128xf32>
      %c0_11 = arith.constant 0 : index
      %c0_12 = arith.constant 0 : index
      %13 = vector.load %arg7[%c0_11, %c0_12] : memref<40x128xf32, #tpu.memory_space<vmem>>, vector<40x128xf32>
      tpu.vector_store %arg7[%c0_11, %c0_12], %12 {strides = array<i32>} : memref<40x128xf32, #tpu.memory_space<vmem>>, vector<40x128xf32>,
    } else {
    }
    %c0 = arith.constant 0 : index
    %c0_1 = arith.constant 0 : index
    %3 = vector.load %arg7[%c0, %c0_1] : memref<40x128xf32, #tpu.memory_space<vmem>>, vector<40x128xf32>
    %c0_2 = arith.constant 0 : index
    %c0_3 = arith.constant 0 : index
    %4 = vector.load %arg2[%c0_2, %c0_3] : memref<40x40xf32, #tpu.memory_space<vmem>>, vector<40x40xf32>
    %c0_4 = arith.constant 0 : index
    %c0_5 = arith.constant 0 : index
    %5 = vector.load %arg3[%c0_4, %c0_5] : memref<40x128xf32, #tpu.memory_space<vmem>>, vector<40x128xf32>
    %cst = arith.constant dense<0.000000e+00> : vector<40x128xf32>
    %6 = tpu.matmul %4, %5, %cst {dimension_numbers = #tpu.dot_dimension_numbers<[1], [0], [0], [1], [0, 0, 1, 1], [], []>} : vector<40x40xf32>, vector<40x128xf32>, vector<40x128xf32> -> vector<40x128xf32>
    %7 = arith.addf %3, %6 : vector<40x128xf32>
    %c0_6 = arith.constant 0 : index
    %c0_7 = arith.constant 0 : index
    %8 = vector.load %arg7[%c0_6, %c0_7] : memref<40x128xf32, #tpu.memory_space<vmem>>, vector<40x128xf32>
    tpu.vector_store %arg7[%c0_6, %c0_7], %7 {strides = array<i32>} : memref<40x128xf32, #tpu.memory_space<vmem>>, vector<40x128xf32>,
    %c0_i32_8 = arith.constant 0 : i32
    %9 = arith.cmpi eq, %arg1, %c0_i32_8 : i32
    %10 = arith.extui %9 : i1 to i32
    %c0_i32_9 = arith.constant 0 : i32
    %11 = arith.cmpi ne, %10, %c0_i32_9 : i32
    scf.if %11 {
      %c0_10 = arith.constant 0 : index
      %c0_11 = arith.constant 0 : index
      %12 = vector.load %arg7[%c0_10, %c0_11] : memref<40x128xf32, #tpu.memory_space<vmem>>, vector<40x128xf32>
      %c0_12 = arith.constant 0 : index
      %c0_13 = arith.constant 0 : index
      %13 = vector.load %arg4[%c0_12, %c0_13] : memref<40x128xf32, #tpu.memory_space<vmem>>, vector<40x128xf32>
      tpu.vector_store %arg4[%c0_12, %c0_13], %12 {strides = array<i32>} : memref<40x128xf32, #tpu.memory_space<vmem>>, vector<40x128xf32>,
      %cst_14 = arith.constant dense<0.000000e+00> : vector<128xf32>
      %14 = vector.multi_reduction <add>, %12, %cst_14 [0] : vector<40x128xf32> to vector<128xf32>
      %15 = vector.shape_cast %14 : vector<128xf32> to vector<1x128xf32>
      %16 = vector.shape_cast %15 : vector<1x128xf32> to vector<1x1x128xf32>
      %c0_15 = arith.constant 0 : index
      %c0_16 = arith.constant 0 : index
      %c0_17 = arith.constant 0 : index
      %17 = vector.load %arg5[%c0_15, %c0_16, %c0_17] : memref<1x1x128xf32, #tpu.memory_space<vmem>>, vector<1x1x128xf32>
      tpu.vector_store %arg5[%c0_15, %c0_16, %c0_17], %16 {strides = array<i32>} : memref<1x1x128xf32, #tpu.memory_space<vmem>>, vector<1x1x128xf32>,
      %18 = arith.mulf %12, %12 : vector<40x128xf32>
      %cst_18 = arith.constant dense<0.000000e+00> : vector<128xf32>
      %19 = vector.multi_reduction <add>, %18, %cst_18 [0] : vector<40x128xf32> to vector<128xf32>
      %20 = vector.shape_cast %19 : vector<128xf32> to vector<1x128xf32>
      %21 = vector.shape_cast %20 : vector<1x128xf32> to vector<1x1x128xf32>
      %c0_19 = arith.constant 0 : index
      %c0_20 = arith.constant 0 : index
      %c0_21 = arith.constant 0 : index
      %22 = vector.load %arg6[%c0_19, %c0_20, %c0_21] : memref<1x1x128xf32, #tpu.memory_space<vmem>>, vector<1x1x128xf32>
      tpu.vector_store %arg6[%c0_19, %c0_20, %c0_21], %21 {strides = array<i32>} : memref<1x1x128xf32, #tpu.memory_space<vmem>>, vector<1x1x128xf32>,
    } else {
    }
    return
  }
  func.func @transform_0(%arg0: i32, %arg1: i32) -> (i32, i32) {
    %c0_i32 = arith.constant 0 : i32
    return %arg0, %arg1 : i32, i32
  }
  func.func @transform_1(%arg0: i32, %arg1: i32) -> (i32, i32) {
    %c0_i32 = arith.constant 0 : i32
    %c0_i32_0 = arith.constant 0 : i32
    return %arg1, %c0_i32 : i32, i32
  }
  func.func @transform_2(%arg0: i32, %arg1: i32) -> (i32, i32) {
    %c0_i32 = arith.constant 0 : i32
    %c0_i32_0 = arith.constant 0 : i32
    return %arg0, %c0_i32 : i32, i32
  }
  func.func @transform_3(%arg0: i32, %arg1: i32) -> (i32, i32, i32) {
    %c0_i32 = arith.constant 0 : i32
    %c0_i32_0 = arith.constant 0 : i32
    %c0_i32_1 = arith.constant 0 : i32
    return %arg0, %c0_i32, %c0_i32_0 : i32, i32, i32
  }
  func.func @transform_4(%arg0: i32, %arg1: i32) -> (i32, i32, i32) {
    %c0_i32 = arith.constant 0 : i32
    %c0_i32_0 = arith.constant 0 : i32
    %c0_i32_1 = arith.constant 0 : i32
    return %arg0, %c0_i32, %c0_i32_0 : i32, i32, i32
  }
}

module attributes {stable_mosaic.version = 11 : i64} {
  func.func @_bn_relu_kernel(%arg0: i32, %arg1: memref<40x128xf32, #tpu.memory_space<vmem>>, %arg2: memref<1x128xf32, #tpu.memory_space<vmem>>, %arg3: memref<1x128xf32, #tpu.memory_space<vmem>>, %arg4: memref<40x128xf32, #tpu.memory_space<vmem>>) attributes {dimension_semantics = [#tpu.dimension_semantics<parallel>], iteration_bounds = array<i64: 4>, scalar_prefetch = 0 : i64, scratch_operands = 0 : i64, tpu.core_type = #tpu.core_type<tc>, window_params = [{transform_indices = @transform_0, window_bounds = array<i64: 40, 128>}, {pipeline_mode = #tpu.pipeline_mode<synchronous>, transform_indices = @transform_1, window_bounds = array<i64: 1, 128>}, {pipeline_mode = #tpu.pipeline_mode<synchronous>, transform_indices = @transform_2, window_bounds = array<i64: 1, 128>}, {transform_indices = @transform_3, window_bounds = array<i64: 40, 128>}]} {
    %c0 = arith.constant 0 : index
    %c0_0 = arith.constant 0 : index
    %0 = vector.load %arg1[%c0, %c0_0] : memref<40x128xf32, #tpu.memory_space<vmem>>, vector<40x128xf32>
    %c0_1 = arith.constant 0 : index
    %c0_2 = arith.constant 0 : index
    %1 = vector.load %arg2[%c0_1, %c0_2] : memref<1x128xf32, #tpu.memory_space<vmem>>, vector<1x128xf32>
    %2 = vector.broadcast %1 : vector<1x128xf32> to vector<40x128xf32>
    %3 = arith.mulf %0, %2 : vector<40x128xf32>
    %c0_3 = arith.constant 0 : index
    %c0_4 = arith.constant 0 : index
    %4 = vector.load %arg3[%c0_3, %c0_4] : memref<1x128xf32, #tpu.memory_space<vmem>>, vector<1x128xf32>
    %5 = vector.broadcast %4 : vector<1x128xf32> to vector<40x128xf32>
    %6 = arith.addf %3, %5 : vector<40x128xf32>
    %cst = arith.constant 0.000000e+00 : f32
    %7 = vector.broadcast %cst : f32 to vector<40x128xf32>
    %8 = arith.maximumf %6, %7 : vector<40x128xf32>
    %c0_5 = arith.constant 0 : index
    %c0_6 = arith.constant 0 : index
    %9 = vector.load %arg4[%c0_5, %c0_6] : memref<40x128xf32, #tpu.memory_space<vmem>>, vector<40x128xf32>
    tpu.vector_store %arg4[%c0_5, %c0_6], %8 {strides = array<i32>} : memref<40x128xf32, #tpu.memory_space<vmem>>, vector<40x128xf32>,
    return
  }
  func.func @transform_0(%arg0: i32) -> (i32, i32) {
    %c0_i32 = arith.constant 0 : i32
    %c0_i32_0 = arith.constant 0 : i32
    return %arg0, %c0_i32 : i32, i32
  }
  func.func @transform_1(%arg0: i32) -> (i32, i32) {
    %c0_i32 = arith.constant 0 : i32
    %c0_i32_0 = arith.constant 0 : i32
    %c0_i32_1 = arith.constant 0 : i32
    return %c0_i32, %c0_i32_0 : i32, i32
  }
  func.func @transform_2(%arg0: i32) -> (i32, i32) {
    %c0_i32 = arith.constant 0 : i32
    %c0_i32_0 = arith.constant 0 : i32
    %c0_i32_1 = arith.constant 0 : i32
    return %c0_i32, %c0_i32_0 : i32, i32
  }
  func.func @transform_3(%arg0: i32) -> (i32, i32) {
    %c0_i32 = arith.constant 0 : i32
    %c0_i32_0 = arith.constant 0 : i32
    return %arg0, %c0_i32 : i32, i32
  }
}

</mosaic_0001>

<bundles_post_ra>
// kernel: conv_block_forward.3
= control target key start
LH: loop header
LB: loop body
LE: loop exit
PB: predicated region body
PF: predicated region fallthrough
CT: control target
= control target key end

     0   :  { %s316_s12 = smov 0   ;;  %s339_s0 = inlined_call_operand.vmem [shape: f32[160,128], index: 0, kind: input, shape index: {}, may-alias: {0,3}]   ;;  %s340_s1 = inlined_call_operand.vmem [shape: f32[1,128], index: 1, kind: input, shape index: {}]   ;;  %s341_s2 = inlined_call_operand.vmem [shape: f32[1,128], index: 2, kind: input, shape index: {}]   ;;  %s342_s3 = inlined_call_operand.vmem [shape: f32[160,128], index: 3, kind: output, shape index: {}, may-alias: {0,3}]  }
   0x1 LB: > { %s269_s13 = sadd.s32 4294967295, %s294_s12   ;;  %p273_p0 = scmp.ge.s32.totalorder %s294_s12, 1  ;;  %s294_s12 = sphi %s316_s12, %s13_s12  }
   0x2   : > { %p138_p1 = scmp.lt.s32.totalorder %s294_s12, 5 }
   0x4   : > { %p139_p2 = pnand %p273_p0, %p138_p1 }
   0x5   : > { %s162_s14 = smul.u32 (!%p139_p2), 5, %s269_s13 }
   0x6   : > { %142 = sbr.rel (%p139_p2) target bundleno = 24 (0x18), region = 32 }
   0x7   : > { %p163_p3 = scmp.lt.s32.totalorder (!%p139_p2), %s162_s14, 19 }
   0xb   : > { %s344_s14 = smov (!%p163_p3, %s162_s14), 19  ;;  %v276_v0 = vld [vmem:[%s340_s1] ss:$0 sm:$0xff] }
   0xc   : > { %s274_s15 = sshll.u32 %s344_s14, 3  ;;  %v277_v1 = vld [vmem:[%s341_s2] ss:$0 sm:$0xff] }
   0xd   : > { %s166_s20 = scalar_lea.vmem %s339_s0, %s274_s15  ;;  %s172_s25 = scalar_lea.vmem %s342_s3, %s274_s15 }
   0xe   : > { %v174_v2 = vld [vmem:[%s166_s20] sm:$0xff]  ;;  %v175_v3 = vld [vmem:[%s166_s20 + $0x8] sm:$0xff]  ;;  %v176_v4 = vld [vmem:[%s166_s20 + $0x10] sm:$0xff] }
   0xf   : > { %v177_v5 = vld [vmem:[%s166_s20 + $0x18] sm:$0xff]  ;;  %v178_v6 = vld [vmem:[%s166_s20 + $0x20] sm:$0xff]  ;;  %v186_v7 = vmul.f32 %v276_v0, %v174_v2  ;;  %v187_v8 = vmul.f32 %v276_v0, %v175_v3  ;;  %v188_v9 = vmul.f32 %v276_v0, %v176_v4 }
  0x10   : > { %v189_v10 = vmul.f32 %v276_v0, %v177_v5  ;;  %v190_v11 = vmul.f32 %v276_v0, %v178_v6 }
  0x11   : > { %v198_v12 = vadd.f32 %v277_v1, %v186_v7  ;;  %v199_v13 = vadd.f32 %v277_v1, %v187_v8  ;;  %v200_v14 = vadd.f32 %v277_v1, %v188_v9 }
  0x12   : > { %v201_v15 = vadd.f32 %v277_v1, %v189_v10  ;;  %v202_v16 = vadd.f32 %v277_v1, %v190_v11 }
  0x13   : > { %v203_v17 = vmax.f32 %v198_v12, 0.0  ;;  %v204_v18 = vmax.f32 %v199_v13, 0.0  ;;  %v205_v19 = vmax.f32 %v200_v14, 0.0 }
  0x14   : > { %v206_v20 = vmax.f32 %v201_v15, 0.0  ;;  %v207_v21 = vmax.f32 %v202_v16, 0.0 }
  0x15   : > { %208 = vst [vmem:[%s172_s25] sm:$0xff] %v203_v17  ;;  %209 = vst [vmem:[%s172_s25 + $0x8] sm:$0xff] %v204_v18 }
  0x16   : > { %210 = vst [vmem:[%s172_s25 + $0x10] sm:$0xff] %v205_v19  ;;  %211 = vst [vmem:[%s172_s25 + $0x18] sm:$0xff] %v206_v20 }
  0x17   : > { %212 = vst [vmem:[%s172_s25 + $0x20] sm:$0xff] %v207_v21 }
  0x18 PF: > { %s13_s12 = sadd.s32 1, %s294_s12  }
  0x19   : > { %p10_p4 = scmp.ge.s32.totalorder %s13_s12, 6  }
  0x1b   :  { %12 = sbr.rel (!%p10_p4) target bundleno = 1 (0x1), region = 62 }

// kernel: conv_block_forward.2
= control target key start
LH: loop header
LB: loop body
LE: loop exit
PB: predicated region body
PF: predicated region fallthrough
CT: control target
= control target key end

     0   :  { %s713_s15 = smov 0   ;;  %s715_s16 = smov 0   ;;  %s785_s0 = inlined_call_operand.vmem [shape: f32[160,40], index: 0, kind: input, shape index: {}]   ;;  %s786_s1 = inlined_call_operand.vmem [shape: f32[40,128], index: 1, kind: input, shape index: {}]   ;;  %s787_s2 = inlined_call_operand.vmem [shape: f32[160,128], index: 2, kind: output, shape index: {0}]   ;;  %s788_s3 = inlined_call_operand.vmem [shape: f32[4,1,128], index: 3, kind: output, shape index: {1}]   ;;  %s789_s4 = inlined_call_operand.vmem [shape: f32[4,1,128], index: 4, kind: output, shape index: {2}]  }
   0x1   :  { %s717_s17 = smov 0  }
   0x2 LB: > { %s27_s18 = sadd.s32 1, %s680_s16  ;;  %p581_p0 = scmp.ge.s32.totalorder %s684_s17, 1  ;;  %s684_s17 = sphi %s717_s17, %s15_s17   ;;  %s680_s16 = sphi %s715_s16, %s791_s16   ;;  %s676_s15 = sphi %s713_s15, %s790_s15  }
   0x3   : > { %p29_p1 = scmp.ge.s32.totalorder %s27_s18, 4  ;;  %p196_p2 = scmp.lt.s32.totalorder %s684_s17, 5 }
   0x5   : > { %s793_s18 = smov (%p29_p1, %s27_s18), 0  ;;  %p197_p3 = pnand %p581_p0, %p196_p2 }
   0x6   : > { %s236_s21 = smul.u32 (!%p197_p3), 5, %s676_s15  ;;  %p257_p5 = scmp.lt.s32.totalorder (!%p197_p3), %s676_s15, 3 }
   0x7   : > { %200 = sbr.rel (%p197_p3) target bundleno = 245 (0xf5), region = 28 }
   0x8   : > { %p237_p4 = scmp.lt.s32.totalorder (!%p197_p3), %s236_s21, 19 }
   0xc   : > { %v286_v0 = vld [vmem:[%s786_s1 + $0x20] sm:$0xff]  ;;  %v686_v1 = vmov 0.0   ;;  %v285_v2 = vld [vmem:[%s786_s1 + $0x18] sm:$0xff]  ;;  %v284_v3 = vld [vmem:[%s786_s1 + $0x10] sm:$0xff]  ;;  %s795_s21 = smov (!%p237_p4, %s236_s21), 19  ;;  %vm687_vm0 = vmmov 0  }
   0xd   : > { %601 = vmatprep.subr.mxu0 %v686_v1  ;;  %626 = vmatprep.subr.mxu1 %v686_v1  ;;  %v283_v4 = vld [vmem:[%s786_s1 + $0x8] sm:$0xff]  ;;  %s582_s28 = sshll.u32 %s795_s21, 3  ;;  %v282_v5 = vld [vmem:[%s786_s1] sm:$0xff]  ;;  %vm287_vm1 = vcmask 326656   ;;  %s797_s15 = smov (!%p257_p5, %s676_s15), 3 }
   0xe   : > { %602 = vmatpush3.msra.mxu0 %v286_v0  ;;  %631 = vmatpush3.msra.mxu1 %v286_v0  ;;  %s243_s7 = scalar_lea.vmem %s785_s0, %s582_s28  ;;  %s255_s10 = scalar_lea.vmem %s787_s2, %s582_s28 }
   0xf   : > { %603 = vmatprep.subr.mxu0 %v686_v1  ;;  %627 = vmatprep.subr.mxu1 %v686_v1  ;;  %v277_v6 = vld [vmem:[%s243_s7] sm:$0xff]  ;;  %v280_v7 = vld [vmem:[%s243_s7 + $0x18] sm:$0xff]  ;;  %v278_v8 = vld [vmem:[%s243_s7 + $0x8] sm:$0xff]  ;;  %s259_s13 = scalar_lea.vmem %s788_s3, %s797_s15  ;;  %s262_s20 = scalar_lea.vmem %s789_s4, %s797_s15 }
  0x10   : > { %604 = vmatpush3.msra.mxu0 %v285_v2  ;;  %632 = vmatpush3.msra.mxu1 %v285_v2  ;;  %v281_v9 = vld [vmem:[%s243_s7 + $0x20] sm:$0xff]  ;;  %v279_v10 = vld [vmem:[%s243_s7 + $0x10] sm:$0xff] }
  0x11   : > { %605 = vmatprep.subr.mxu0 %v686_v1  ;;  %611 = vmatprep.mubr.msk.f32.mxu0 %vm687_vm0, %v686_v1 }
  0x12   : > { %606 = vmatpush3.msra.mxu0 %v284_v3  ;;  %628 = vmatprep.subr.mxu1 %v686_v1 }
  0x13   : > { %607 = vmatprep.subr.mxu0 %v686_v1  ;;  %633 = vmatpush3.msra.mxu1 %v284_v3 }
  0x14   : > { %608 = vmatpush3.msra.mxu0 %v283_v4  ;;  %629 = vmatprep.subr.mxu1 %v686_v1 }
  0x15   : > { %609 = vmatprep.subr.mxu0 %v686_v1  ;;  %634 = vmatpush3.msra.mxu1 %v283_v4 }
  0x16   : > { %610 = vmatpush3.msra.mxu0 %v282_v5  ;;  %630 = vmatprep.subr.mxu1 %v686_v1 }
  0x17   : > { %612 = vmatmul.mubr.msk.f32.vlgmr.msra.gmra.mxu0 %vm287_vm1, %v277_v6  ;;  %635 = vmatpush3.msra.mxu1 %v282_v5 }
  0x18   : > { %614 = vmatprep.mubr.msk.f32.mxu0 %vm687_vm0, %v686_v1  ;;  %620 = vmatprep.mubr.msk.f32.mxu1 %vm687_vm0, %v686_v1 }
  0x19   : > { %621 = vmatmul.mubr.msk.f32.vlgmr.msra.gmra.mxu1 %vm287_vm1, %v280_v7 }
  0x1a   : > { %623 = vmatprep.mubr.msk.f32.mxu1 %vm687_vm0, %v686_v1 }
  0x1b   : > { %615 = vmatmul.mubr.msk.f32.gmra.mxu0 %vm287_vm1, %v278_v8 }
  0x1c   : > { %617 = vmatprep.mubr.msk.f32.mxu0 %vm687_vm0, %v686_v1 }
  0x1d   : > { %624 = vmatmul.mubr.msk.f32.gmra.mxu1 %vm287_vm1, %v281_v9 }
  0x1f   : > { %618 = vmatmul.mubr.msk.f32.gmra.mxu0 %vm287_vm1, %v279_v10 }
  0xd7   : > { %v369_v11 = vpop.f32.mrf.mxu0 }
  0xd8   : > { %411 = vst [vmem:[%s255_s10] sm:$0xff] %v369_v11  ;;  %v427_v19 = vmul.f32 %v369_v11, %v369_v11 }
  0xd9   : > { %v613_v12 = vpop.f32.mrf.mxu0  ;;  %v384_v13 = vpop.f32.mrf.mxu1 }
  0xda   : > { %414 = vst [vmem:[%s255_s10 + $0x18] sm:$0xff] %v384_v13  ;;  %v430_v27 = vmul.f32 %v384_v13, %v384_v13 }
  0xdb   : > { %v374_v14 = vpop.f32.mrf.mxu0  ;;  %v622_v15 = vpop.f32.mrf.mxu1 }
  0xdc   : > { %412 = vst [vmem:[%s255_s10 + $0x8] sm:$0xff] %v374_v14  ;;  %v428_v16 = vmul.f32 %v374_v14, %v374_v14  ;;  %v416_v20 = vadd.f32 %v374_v14, %v369_v11 }
  0xdd   : > { %v616_v17 = vpop.f32.mrf.mxu0  ;;  %v389_v18 = vpop.f32.mrf.mxu1 }
  0xde   : > { %415 = vst [vmem:[%s255_s10 + $0x20] sm:$0xff] %v389_v18  ;;  %v432_v23 = vadd.f32 %v428_v16, %v427_v19  ;;  %v431_v30 = vmul.f32 %v389_v18, %v389_v18 }
  0xdf   : > { %v379_v21 = vpop.f32.mrf.mxu0  ;;  %v625_v22 = vpop.f32.mrf.mxu1 }
  0xe0   : > { %413 = vst [vmem:[%s255_s10 + $0x10] sm:$0xff] %v379_v21  ;;  %v417_v24 = vadd.f32 %v416_v20, %v379_v21  ;;  %v429_v25 = vmul.f32 %v379_v21, %v379_v21 }
  0xe1   : > { %v619_v26 = vpop.f32.mrf.mxu0 }
  0xe2   : > { %v433_v28 = vadd.f32 %v432_v23, %v429_v25  ;;  %v418_v29 = vadd.f32 %v417_v24, %v384_v13 }
  0xe4   : > { %v419_v31 = vadd.f32 %v418_v29, %v389_v18  ;;  %v434_v32 = vadd.f32 %v433_v28, %v430_v27 }
  0xe6   : > { %v420_v33 = vrot.slane %v419_v31, 4  ;;  %v435_v34 = vadd.f32 %v434_v32, %v431_v30 }
  0xe8   : > { %v421_v35 = vadd.f32 %v420_v33, %v419_v31  ;;  %v436_v36 = vrot.slane %v435_v34, 4 }
  0xea   : > { %v422_v37 = vrot.slane %v421_v35, 2  ;;  %v437_v38 = vadd.f32 %v436_v36, %v435_v34 }
  0xec   : > { %v423_v39 = vadd.f32 %v422_v37, %v421_v35  ;;  %v438_v40 = vrot.slane %v437_v38, 2 }
  0xee   : > { %v424_v41 = vrot.slane %v423_v39, 1  ;;  %v439_v42 = vadd.f32 %v438_v40, %v437_v38 }
  0xf0   : > { %v425_v43 = vadd.f32 %v424_v41, %v423_v39  ;;  %v440_v44 = vrot.slane %v439_v42, 1 }
  0xf2   : > { %426 = vst [vmem:[%s259_s13] sm:$0x1] %v425_v43  ;;  %v441_v45 = vadd.f32 %v440_v44, %v439_v42 }
  0xf4   : > { %442 = vst [vmem:[%s262_s20] sm:$0x1] %v441_v45 }
  0xf5 PF: > { %s15_s17 = sadd.s32 1, %s684_s17   ;;  %s790_s15 = smov %s680_s16 }
  0xf6   : > { %p12_p6 = scmp.ge.s32.totalorder %s15_s17, 6   ;;  %s791_s16 = smov %s793_s18 }
  0xf8   :  { %14 = sbr.rel (!%p12_p6) target bundleno = 2 (0x2), region = 93 }

</bundles_post_ra>
